<compile_context>
chip_gen: v6e
topology: v6e:2x2x1
jax: 0.10.0
libtpu: 0.0.40
codegen_flags: <defaults>
</compile_context>

<pallas_src>
import jax
import jax.numpy as jnp
from jax.experimental import pallas as pl
from jax.experimental.pallas import tpu as pltpu

_TB_MAX = 1024                      # hard cap on the batch tile (rows)
_MIN_ROWS = 8                       # sublane granularity
_VMEM_BUDGET = 20 * 1024 * 1024     # planning budget used for tile sizing
_VMEM_LIMIT = 40 * 1024 * 1024      # scoped-VMEM limit passed to Mosaic (safe on v5e/v6e/v7x)


# ---------------------------------------------------------------------------
# Kernel bodies
# ---------------------------------------------------------------------------
def _log_softmax(logits):
    m = jnp.max(logits, axis=-1, keepdims=True)
    z = logits - m
    lse = jnp.log(jnp.sum(jnp.exp(z), axis=-1, keepdims=True))
    return z - lse


def actor_logp_kernel(meta_ref, state_ref, w1_ref, b1_ref, w2_ref, b2_ref,
                      sel_ref, logp_ref):
    """Actor hypernetwork forward -> log-softmax(logits).

    Layer 1: fused [hyper_w | hyper_b] matmul.
    Layer 2: one block-diagonal matmul -> raw = [wflat (A*S, action-major) | bias (A)].
    Dynamic apply: (raw * [tile(state, A) | ones(A)]) @ sel  (one VPU mul + one MXU dot).
    """
    A = logp_ref.shape[-1]
    tb = state_ref.shape[0]
    meta = meta_ref[...]
    state = state_ref[...]
    h = jnp.maximum(
        jnp.dot(meta, w1_ref[...], preferred_element_type=jnp.float32) + b1_ref[...], 0.0)
    raw = jnp.dot(h, w2_ref[...], preferred_element_type=jnp.float32) + b2_ref[...]
    ext = jnp.concatenate(
        [jnp.tile(state, (1, A)), jnp.ones((tb, A), jnp.float32)], axis=-1)
    logits = jnp.dot(raw * ext, sel_ref[...], preferred_element_type=jnp.float32)
    logp_ref[...] = _log_softmax(logits)


def eval_kernel(meta_ref, state_ref, action_ref, w1_ref, b1_ref, w2_ref,
                b2_ref, sel_l_ref, sel_v_ref, out_ref):
    """Fused actor+critic evaluate -> packed (TB, 3) [action_logprob, value, entropy].

    Layer 1: one matmul for all four hyper branches [a_w | c_w | a_b | c_b].
    Layer 2: one block-diagonal matmul ->
       raw = [a_wflat (A*S) | c_wflat (S) | a_bias (A) | c_bias (1)].
    Dynamic apply: masked = raw * [tile(state, A+1) | ones(A+1)], then
       logits = masked @ sel_l,  value = masked @ sel_v   (all MXU, no slices).
    """
    A = sel_l_ref.shape[-1]
    tb = state_ref.shape[0]
    meta = meta_ref[...]
    state = state_ref[...]
    h = jnp.maximum(
        jnp.dot(meta, w1_ref[...], preferred_element_type=jnp.float32) + b1_ref[...], 0.0)
    raw = jnp.dot(h, w2_ref[...], preferred_element_type=jnp.float32) + b2_ref[...]
    ext = jnp.concatenate(
        [jnp.tile(state, (1, A + 1)), jnp.ones((tb, A + 1), jnp.float32)], axis=-1)
    masked = raw * ext
    logits = jnp.dot(masked, sel_l_ref[...], preferred_element_type=jnp.float32)   # (TB, A)
    value = jnp.dot(masked, sel_v_ref[...], preferred_element_type=jnp.float32)    # (TB, 1)

    logp = _log_softmax(logits)
    probs = jnp.exp(logp)
    entropy = -jnp.sum(probs * logp, axis=-1, keepdims=True)
    a_idx = jax.lax.broadcasted_iota(jnp.int32, logp.shape, 1)
    onehot = (a_idx == action_ref[...]).astype(jnp.float32)
    action_logprob = jnp.sum(logp * onehot, axis=-1, keepdims=True)

    out_ref[...] = jnp.concatenate([action_logprob, value, entropy], axis=-1)


# ---------------------------------------------------------------------------
# pallas_call wrappers (batch grid, VMEM-resident weights)
# ---------------------------------------------------------------------------
def _pad_rows(x, rows):
    pad = rows - x.shape[0]
    return x if pad == 0 else jnp.pad(x, ((0, pad), (0, 0)))


def _batched(tb, feat):
    return pl.BlockSpec((tb, feat), lambda i: (i, 0))


def _resident(arr):
    # Constant index_map: weight stays VMEM-resident; the pipeline skips
    # redundant re-fetches across grid steps.
    # TODO(synk): pipeline_mode=pl.Buffered(1) would halve the weight VMEM
    # footprint; default double-buffering kept for lowering compatibility and
    # accounted 2x in the tile-size budget instead.
    return pl.BlockSpec(arr.shape, lambda i: (0, 0))


def _tile_and_pad(batch, per_row_bytes, weight_bytes):
    """Pick (TB, padded batch): VMEM-bounded, >=2 grid steps for large batches
    (v7x 2-TensorCore sharding), even split so padding waste stays small."""
    avail = max(_VMEM_BUDGET - weight_bytes, 256 * 1024)
    tb_fit = max(_MIN_ROWS,
                 min(_TB_MAX, (avail // max(per_row_bytes, 1)) // _MIN_ROWS * _MIN_ROWS))
    min_steps = 2 if batch >= 8 * _MIN_ROWS else 1
    steps = max(pl.cdiv(batch, tb_fit), min_steps)
    tb = pl.cdiv(pl.cdiv(batch, steps), _MIN_ROWS) * _MIN_ROWS
    return tb, steps * tb


def hyper_actor_logp(meta_v, state, actor_pack):
    """Actor forward -> log-probs (B, action_dim)."""
    B, M = meta_v.shape
    S = state.shape[1]
    w1, b1, w2, b2, sel = actor_pack
    A = sel.shape[1]
    Dw = w2.shape[1]                                           # A*(S+1)
    weight_bytes = 8 * sum(int(p.size) for p in actor_pack)    # f32, 2x buffered
    per_row_bytes = 4 * (2 * (M + S + A) + w1.shape[1] + 4 * Dw + 8 * A)
    TB, Bp = _tile_and_pad(B, per_row_bytes, weight_bytes)
    logp = pl.pallas_call(
        actor_logp_kernel,
        out_shape=jax.ShapeDtypeStruct((Bp, A), jnp.float32),
        grid=(Bp // TB,),
        in_specs=[_batched(TB, M), _batched(TB, S)] + [_resident(p) for p in actor_pack],
        out_specs=_batched(TB, A),
        compiler_params=pltpu.CompilerParams(
            dimension_semantics=("parallel",), vmem_limit_bytes=_VMEM_LIMIT),
    )(_pad_rows(meta_v, Bp), _pad_rows(state, Bp), *actor_pack)
    return logp[:B]


def hyper_evaluate_fused(meta_v, state, action, eval_pack):
    """Fused actor+critic evaluate -> (logprobs (B,), values (B,1), entropy (B,))."""
    B, M = meta_v.shape
    S = state.shape[1]
    w1, b1, w2, b2, sel_l, sel_v = eval_pack
    A = sel_l.shape[1]
    Dw = w2.shape[1]                                           # (A+1)*(S+1)
    weight_bytes = 8 * sum(int(p.size) for p in eval_pack)
    per_row_bytes = 4 * (2 * (M + S + 1 + 3) + w1.shape[1] + 4 * Dw + 10 * A + 8)
    TB, Bp = _tile_and_pad(B, per_row_bytes, weight_bytes)
    action_col = action.reshape(B, 1).astype(jnp.int32)
    out = pl.pallas_call(
        eval_kernel,
        out_shape=jax.ShapeDtypeStruct((Bp, 3), jnp.float32),
        grid=(Bp // TB,),
        in_specs=[_batched(TB, M), _batched(TB, S), _batched(TB, 1)]
                 + [_resident(p) for p in eval_pack],
        out_specs=_batched(TB, 3),
        compiler_params=pltpu.CompilerParams(
            dimension_semantics=("parallel",), vmem_limit_bytes=_VMEM_LIMIT),
    )(_pad_rows(meta_v, Bp), _pad_rows(state, Bp), _pad_rows(action_col, Bp), *eval_pack)
    out = out[:B]
    return out[:, 0], out[:, 1:2], out[:, 2]


# ---------------------------------------------------------------------------
# Parameter init (PyTorch nn.Linear default U(+-1/sqrt(fan_in))) and the
# layout transforms baked in at init (layer-1/layer-2 fusion, action-major
# weight columns, selection matrices).
# ---------------------------------------------------------------------------
def _linear_init(key, fan_in, fan_out):
    kw, kb = jax.random.split(key)
    bound = float(fan_in) ** -0.5
    w = jax.random.uniform(kw, (fan_in, fan_out), jnp.float32, -bound, bound)
    b = jax.random.uniform(kb, (1, fan_out), jnp.float32, -bound, bound)
    return w, b


def init_hyper_branch(key, meta_v_dim, state_dim, out_dim, hidden_dim):
    """Raw params of one HyperNetworkCH (PyTorch layout)."""
    k1, k2, k3, k4 = jax.random.split(key, 4)
    w1w, b1w = _linear_init(k1, meta_v_dim, hidden_dim)
    w2w, b2w = _linear_init(k2, hidden_dim, state_dim * out_dim)
    w1b, b1b = _linear_init(k3, meta_v_dim, hidden_dim)
    w2b, b2b = _linear_init(k4, hidden_dim, out_dim)
    return dict(w1w=w1w, b1w=b1w, w2w=w2w, b2w=b2w, w1b=w1b, b1b=b1b, w2b=w2b, b2b=b2b)


def _amajor_perm(state_dim, out_dim):
    # PyTorch view(B, S, O) flattening is s-major (col = s*O + a); the kernels
    # use action-major (col = a*S + s) so each action's weights are lane-contiguous.
    return jnp.arange(state_dim * out_dim).reshape(state_dim, out_dim).T.reshape(-1)


def make_actor_pack(actor_raw, state_dim, action_dim):
    S, A = state_dim, action_dim
    H = actor_raw['w1w'].shape[1]
    perm = _amajor_perm(S, A)
    aw2w = actor_raw['w2w'][:, perm]
    ab2w = actor_raw['b2w'][:, perm]
    w1 = jnp.concatenate([actor_raw['w1w'], actor_raw['w1b']], axis=1)     # (M, 2H)
    b1 = jnp.concatenate([actor_raw['b1w'], actor_raw['b1b']], axis=1)     # (1, 2H)
    D = A * (S + 1)            # columns: [wflat (A*S, a-major) | bias (A)]
    w2 = jnp.zeros((2 * H, D), jnp.float32)
    w2 = w2.at[:H, :A * S].set(aw2w)
    w2 = w2.at[H:, A * S:].set(actor_raw['w2b'])
    b2 = jnp.concatenate([ab2w, actor_raw['b2b']], axis=1)                 # (1, D)
    a_of_col = jnp.arange(A * S) // S
    sel_w = (a_of_col[:, None] == jnp.arange(A)[None, :]).astype(jnp.float32)
    sel = jnp.concatenate([sel_w, jnp.eye(A, dtype=jnp.float32)], axis=0)  # (D, A)
    return (w1, b1, w2, b2, sel)


def make_eval_pack(actor_raw, critic_raw, state_dim, action_dim):
    S, A = state_dim, action_dim
    H = actor_raw['w1w'].shape[1]
    perm = _amajor_perm(S, A)
    aw2w = actor_raw['w2w'][:, perm]
    ab2w = actor_raw['b2w'][:, perm]
    # critic out_dim == 1: its flattened weight is already "action-major".
    w1 = jnp.concatenate([actor_raw['w1w'], critic_raw['w1w'],
                          actor_raw['w1b'], critic_raw['w1b']], axis=1)    # (M, 4H)
    b1 = jnp.concatenate([actor_raw['b1w'], critic_raw['b1w'],
                          actor_raw['b1b'], critic_raw['b1b']], axis=1)    # (1, 4H)
    D = (A + 1) * (S + 1)      # [a_wflat (A*S) | c_wflat (S) | a_bias (A) | c_bias (1)]
    w2 = jnp.zeros((4 * H, D), jnp.float32)
    w2 = w2.at[0 * H:1 * H, 0:A * S].set(aw2w)
    w2 = w2.at[1 * H:2 * H, A * S:A * S + S].set(critic_raw['w2w'])
    w2 = w2.at[2 * H:3 * H, A * S + S:A * S + S + A].set(actor_raw['w2b'])
    w2 = w2.at[3 * H:4 * H, A * S + S + A:].set(critic_raw['w2b'])
    b2 = jnp.concatenate([ab2w, critic_raw['b2w'],
                          actor_raw['b2b'], critic_raw['b2b']], axis=1)    # (1, D)
    col = jnp.arange(D)
    aw_rows = col < A * S
    ab_rows = (col >= A * S + S) & (col < A * S + S + A)
    a_of_col = jnp.where(aw_rows, col // S, col - (A * S + S))
    sel_l = ((aw_rows | ab_rows)[:, None]
             & (a_of_col[:, None] == jnp.arange(A)[None, :])).astype(jnp.float32)   # (D, A)
    c_rows = ((col >= A * S) & (col < A * S + S)) | (col == A * S + S + A)
    sel_v = c_rows.astype(jnp.float32)[:, None]                                      # (D, 1)
    return (w1, b1, w2, b2, sel_l, sel_v)


# ---------------------------------------------------------------------------
# HyperACCH-equivalent act / evaluate
# ---------------------------------------------------------------------------
def act(meta_v, state, actor_pack, key, ret_prob=False):
    logp = hyper_actor_logp(meta_v, state, actor_pack)
    # TODO(synk): the Categorical draw stays in plain JAX (jax.random.categorical);
    # a fused in-kernel Gumbel-max (pltpu.prng_seed/prng_random_bits) would save
    # the (B, A) HBM round-trip on the ret_prob=False rollout path.
    action = jax.random.categorical(key, logp, axis=-1)
    action_logprob = jnp.take_along_axis(logp, action[:, None], axis=-1)[:, 0]
    if ret_prob:
        return action, action_logprob, jnp.exp(logp)   # exp(log_softmax) == softmax
    return action, action_logprob


def evaluate(meta_v, state, action, eval_pack):
    return hyper_evaluate_fused(meta_v, state, action, eval_pack)


# ---------------------------------------------------------------------------
# Pure-JAX reference in the original PyTorch layout (for correctness checks)
# ---------------------------------------------------------------------------
def _ref_hyper_forward(meta, state, p, state_dim, out_dim):
    hw = jnp.maximum(meta @ p['w1w'] + p['b1w'], 0.0)
    w = hw @ p['w2w'] + p['b2w']                    # (B, S*out), s-major
    hb = jnp.maximum(meta @ p['w1b'] + p['b1b'], 0.0)
    b = hb @ p['w2b'] + p['b2b']                    # (B, out)
    W = w.reshape(-1, state_dim, out_dim)
    return jnp.einsum('bs,bso->bo', state, W) + b


# ---------------------------------------------------------------------------
if __name__ == "__main__":
    B, META_V_DIM, STATE_DIM, ACTION_DIM, HIDDEN_DIM = 2, 8, 16, 4, 32

    root = jax.random.PRNGKey(0)
    k_meta, k_state, k_actor, k_critic, k_sample, k_big = jax.random.split(root, 6)

    meta_v = jax.random.normal(k_meta, (B, META_V_DIM), jnp.float32)
    state = jax.random.normal(k_state, (B, STATE_DIM), jnp.float32)

    actor_raw = init_hyper_branch(k_actor, META_V_DIM, STATE_DIM, ACTION_DIM, HIDDEN_DIM)
    critic_raw = init_hyper_branch(k_critic, META_V_DIM, STATE_DIM, 1, HIDDEN_DIM)
    actor_pack = make_actor_pack(actor_raw, STATE_DIM, ACTION_DIM)
    eval_pack = make_eval_pack(actor_raw, critic_raw, STATE_DIM, ACTION_DIM)

    # act path
    action, action_logprob, probs = act(meta_v, state, actor_pack, k_sample, ret_prob=True)
    # evaluate path (fused actor+critic kernel)
    logprobs, state_values, entropy = evaluate(meta_v, state, action, eval_pack)
    jax.block_until_ready((action, action_logprob, probs, logprobs, state_values, entropy))

    # --- correctness vs pure-JAX reference (PyTorch-layout math) ---
    ref_logits = _ref_hyper_forward(meta_v, state, actor_raw, STATE_DIM, ACTION_DIM)
    ref_logp = jax.nn.log_softmax(ref_logits, axis=-1)
    ref_probs = jnp.exp(ref_logp)
    ref_alp = jnp.take_along_axis(ref_logp, action[:, None], axis=-1)[:, 0]
    ref_ent = -jnp.sum(ref_probs * ref_logp, axis=-1)
    ref_val = _ref_hyper_forward(meta_v, state, critic_raw, STATE_DIM, 1)

    assert action.shape == (B,)
    assert probs.shape == (B, ACTION_DIM)
    assert state_values.shape == (B, 1)
    assert entropy.shape == (B,)
    assert bool(jnp.allclose(probs, ref_probs, atol=1e-4, rtol=1e-4))
    assert bool(jnp.allclose(action_logprob, ref_alp, atol=1e-4, rtol=1e-4))
    assert bool(jnp.allclose(logprobs, ref_alp, atol=1e-4, rtol=1e-4))
    assert bool(jnp.allclose(entropy, ref_ent, atol=1e-4, rtol=1e-4))
    assert bool(jnp.allclose(state_values, ref_val, atol=1e-4, rtol=1e-4))

    # --- a larger, non-tile-aligned batch exercises grid > 1 and row padding ---
    B2 = 100
    km2, ks2, ka2 = jax.random.split(k_big, 3)
    meta2 = jax.random.normal(km2, (B2, META_V_DIM), jnp.float32)
    state2 = jax.random.normal(ks2, (B2, STATE_DIM), jnp.float32)
    act2 = jax.random.randint(ka2, (B2,), 0, ACTION_DIM)
    lp2, val2, ent2 = evaluate(meta2, state2, act2, eval_pack)
    jax.block_until_ready((lp2, val2, ent2))
    rlogits2 = _ref_hyper_forward(meta2, state2, actor_raw, STATE_DIM, ACTION_DIM)
    rlogp2 = jax.nn.log_softmax(rlogits2, axis=-1)
    ralp2 = jnp.take_along_axis(rlogp2, act2[:, None], axis=-1)[:, 0]
    rent2 = -jnp.sum(jnp.exp(rlogp2) * rlogp2, axis=-1)
    rval2 = _ref_hyper_forward(meta2, state2, critic_raw, STATE_DIM, 1)
    assert bool(jnp.allclose(lp2, ralp2, atol=1e-4, rtol=1e-4))
    assert bool(jnp.allclose(ent2, rent2, atol=1e-4, rtol=1e-4))
    assert bool(jnp.allclose(val2, rval2, atol=1e-4, rtol=1e-4))

    print("KERNEL_OK")
</pallas_src>

<mosaic_0001>
module attributes {stable_mosaic.version = 11 : i64} {
  func.func @actor_logp_kernel(%arg0: i32, %arg1: memref<8x8xf32, #tpu.memory_space<vmem>>, %arg2: memref<8x16xf32, #tpu.memory_space<vmem>>, %arg3: memref<8x64xf32, #tpu.memory_space<vmem>>, %arg4: memref<1x64xf32, #tpu.memory_space<vmem>>, %arg5: memref<64x68xf32, #tpu.memory_space<vmem>>, %arg6: memref<1x68xf32, #tpu.memory_space<vmem>>, %arg7: memref<68x4xf32, #tpu.memory_space<vmem>>, %arg8: memref<8x4xf32, #tpu.memory_space<vmem>>) attributes {dimension_semantics = [#tpu.dimension_semantics<parallel>], iteration_bounds = array<i64: 1>, scalar_prefetch = 0 : i64, scratch_operands = 0 : i64, tpu.core_type = #tpu.core_type<tc>, window_params = [{transform_indices = @transform_0, window_bounds = array<i64: 8, 8>}, {transform_indices = @transform_1, window_bounds = array<i64: 8, 16>}, {pipeline_mode = #tpu.pipeline_mode<synchronous>, transform_indices = @transform_2, window_bounds = array<i64: 8, 64>}, {pipeline_mode = #tpu.pipeline_mode<synchronous>, transform_indices = @transform_3, window_bounds = array<i64: 1, 64>}, {pipeline_mode = #tpu.pipeline_mode<synchronous>, transform_indices = @transform_4, window_bounds = array<i64: 64, 68>}, {pipeline_mode = #tpu.pipeline_mode<synchronous>, transform_indices = @transform_5, window_bounds = array<i64: 1, 68>}, {pipeline_mode = #tpu.pipeline_mode<synchronous>, transform_indices = @transform_6, window_bounds = array<i64: 68, 4>}, {transform_indices = @transform_7, window_bounds = array<i64: 8, 4>}]} {
    %c0 = arith.constant 0 : index
    %c0_0 = arith.constant 0 : index
    %0 = vector.load %arg1[%c0, %c0_0] : memref<8x8xf32, #tpu.memory_space<vmem>>, vector<8x8xf32>
    %c0_1 = arith.constant 0 : index
    %c0_2 = arith.constant 0 : index
    %1 = vector.load %arg2[%c0_1, %c0_2] : memref<8x16xf32, #tpu.memory_space<vmem>>, vector<8x16xf32>
    %c0_3 = arith.constant 0 : index
    %c0_4 = arith.constant 0 : index
    %2 = vector.load %arg3[%c0_3, %c0_4] : memref<8x64xf32, #tpu.memory_space<vmem>>, vector<8x64xf32>
    %cst = arith.constant dense<0.000000e+00> : vector<8x64xf32>
    %3 = tpu.matmul %0, %2, %cst {dimension_numbers = #tpu.dot_dimension_numbers<[1], [0], [0], [1], [0, 0, 1, 1], [], []>} : vector<8x8xf32>, vector<8x64xf32>, vector<8x64xf32> -> vector<8x64xf32>
    %c0_5 = arith.constant 0 : index
    %c0_6 = arith.constant 0 : index
    %4 = vector.load %arg4[%c0_5, %c0_6] : memref<1x64xf32, #tpu.memory_space<vmem>>, vector<1x64xf32>
    %5 = vector.broadcast %4 : vector<1x64xf32> to vector<8x64xf32>
    %6 = arith.addf %3, %5 : vector<8x64xf32>
    %cst_7 = arith.constant 0.000000e+00 : f32
    %7 = vector.broadcast %cst_7 : f32 to vector<8x64xf32>
    %8 = arith.maximumf %6, %7 : vector<8x64xf32>
    %c0_8 = arith.constant 0 : index
    %c0_9 = arith.constant 0 : index
    %9 = vector.load %arg5[%c0_8, %c0_9] : memref<64x68xf32, #tpu.memory_space<vmem>>, vector<64x68xf32>
    %cst_10 = arith.constant dense<0.000000e+00> : vector<8x68xf32>
    %10 = tpu.matmul %8, %9, %cst_10 {dimension_numbers = #tpu.dot_dimension_numbers<[1], [0], [0], [1], [0, 0, 1, 1], [], []>} : vector<8x64xf32>, vector<64x68xf32>, vector<8x68xf32> -> vector<8x68xf32>
    %c0_11 = arith.constant 0 : index
    %c0_12 = arith.constant 0 : index
    %11 = vector.load %arg6[%c0_11, %c0_12] : memref<1x68xf32, #tpu.memory_space<vmem>>, vector<1x68xf32>
    %12 = vector.broadcast %11 : vector<1x68xf32> to vector<8x68xf32>
    %13 = arith.addf %10, %12 : vector<8x68xf32>
    %14 = tpu.concatenate %1, %1, %1, %1 in 1 : vector<8x16xf32>, vector<8x16xf32>, vector<8x16xf32>, vector<8x16xf32> -> vector<8x64xf32>
    %cst_13 = arith.constant 1.000000e+00 : f32
    %15 = vector.broadcast %cst_13 : f32 to vector<8x4xf32>
    %16 = tpu.concatenate %14, %15 in 1 : vector<8x64xf32>, vector<8x4xf32> -> vector<8x68xf32>
    %17 = arith.mulf %13, %16 : vector<8x68xf32>
    %c0_14 = arith.constant 0 : index
    %c0_15 = arith.constant 0 : index
    %18 = vector.load %arg7[%c0_14, %c0_15] : memref<68x4xf32, #tpu.memory_space<vmem>>, vector<68x4xf32>
    %cst_16 = arith.constant dense<0.000000e+00> : vector<8x4xf32>
    %19 = tpu.matmul %17, %18, %cst_16 {dimension_numbers = #tpu.dot_dimension_numbers<[1], [0], [0], [1], [0, 0, 1, 1], [], []>} : vector<8x68xf32>, vector<68x4xf32>, vector<8x4xf32> -> vector<8x4xf32>
    %cst_17 = arith.constant dense<0xFF800000> : vector<8xf32>
    %20 = vector.multi_reduction <maximumf>, %19, %cst_17 [1] : vector<8x4xf32> to vector<8xf32>
    %21 = vector.shape_cast %20 : vector<8xf32> to vector<8x1xf32>
    %22 = vector.broadcast %21 : vector<8x1xf32> to vector<8x4xf32>
    %23 = arith.subf %19, %22 : vector<8x4xf32>
    %24 = math.exp %23 : vector<8x4xf32>
    %cst_18 = arith.constant dense<0.000000e+00> : vector<8xf32>
    %25 = vector.multi_reduction <add>, %24, %cst_18 [1] : vector<8x4xf32> to vector<8xf32>
    %26 = vector.shape_cast %25 : vector<8xf32> to vector<8x1xf32>
    %27 = math.log %26 : vector<8x1xf32>
    %28 = vector.broadcast %27 : vector<8x1xf32> to vector<8x4xf32>
    %29 = arith.subf %23, %28 : vector<8x4xf32>
    %c0_19 = arith.constant 0 : index
    %c0_20 = arith.constant 0 : index
    %30 = vector.load %arg8[%c0_19, %c0_20] : memref<8x4xf32, #tpu.memory_space<vmem>>, vector<8x4xf32>
    tpu.vector_store %arg8[%c0_19, %c0_20], %29 {strides = array<i32>} : memref<8x4xf32, #tpu.memory_space<vmem>>, vector<8x4xf32>,
    return
  }
  func.func @transform_0(%arg0: i32) -> (i32, i32) {
    %c0_i32 = arith.constant 0 : i32
    %c0_i32_0 = arith.constant 0 : i32
    return %arg0, %c0_i32 : i32, i32
  }
  func.func @transform_1(%arg0: i32) -> (i32, i32) {
    %c0_i32 = arith.constant 0 : i32
    %c0_i32_0 = arith.constant 0 : i32
    return %arg0, %c0_i32 : i32, i32
  }
  func.func @transform_2(%arg0: i32) -> (i32, i32) {
    %c0_i32 = arith.constant 0 : i32
    %c0_i32_0 = arith.constant 0 : i32
    %c0_i32_1 = arith.constant 0 : i32
    return %c0_i32, %c0_i32_0 : i32, i32
  }
  func.func @transform_3(%arg0: i32) -> (i32, i32) {
    %c0_i32 = arith.constant 0 : i32
    %c0_i32_0 = arith.constant 0 : i32
    %c0_i32_1 = arith.constant 0 : i32
    return %c0_i32, %c0_i32_0 : i32, i32
  }
  func.func @transform_4(%arg0: i32) -> (i32, i32) {
    %c0_i32 = arith.constant 0 : i32
    %c0_i32_0 = arith.constant 0 : i32
    %c0_i32_1 = arith.constant 0 : i32
    return %c0_i32, %c0_i32_0 : i32, i32
  }
  func.func @transform_5(%arg0: i32) -> (i32, i32) {
    %c0_i32 = arith.constant 0 : i32
    %c0_i32_0 = arith.constant 0 : i32
    %c0_i32_1 = arith.constant 0 : i32
    return %c0_i32, %c0_i32_0 : i32, i32
  }
  func.func @transform_6(%arg0: i32) -> (i32, i32) {
    %c0_i32 = arith.constant 0 : i32
    %c0_i32_0 = arith.constant 0 : i32
    %c0_i32_1 = arith.constant 0 : i32
    return %c0_i32, %c0_i32_0 : i32, i32
  }
  func.func @transform_7(%arg0: i32) -> (i32, i32) {
    %c0_i32 = arith.constant 0 : i32
    %c0_i32_0 = arith.constant 0 : i32
    return %arg0, %c0_i32 : i32, i32
  }
}

</mosaic_0001>

<bundles_post_ra>
// kernel: tpu_custom_call.1
= control target key start
LH: loop header
LB: loop body
LE: loop exit
PB: predicated region body
PF: predicated region fallthrough
CT: control target
= control target key end

     0   :  { %12 = vsyncpa [#allocation3], 0  ;;  %s618_s0 = inlined_call_operand.vmem [shape: f32[8,8], index: 0, kind: input, shape index: {}]   ;;  %s619_s1 = inlined_call_operand.vmem [shape: f32[8,16], index: 1, kind: input, shape index: {}]   ;;  %s620_s2 = inlined_call_operand.hbm [shape: f32[8,64], index: 2, kind: input, shape index: {}]   ;;  %s621_s3 = inlined_call_operand.vmem [shape: f32[1,64], index: 3, kind: input, shape index: {}]   ;;  %s622_s4 = inlined_call_operand.vmem [shape: f32[64,68], index: 4, kind: input, shape index: {}]   ;;  %s623_s5 = inlined_call_operand.hbm [shape: f32[1,68], index: 5, kind: input, shape index: {}]   ;;  %s624_s6 = inlined_call_operand.vmem [shape: f32[68,4], index: 6, kind: input, shape index: {}]   ;;  %s625_s7 = inlined_call_operand.vmem [shape: f32[8,4], index: 7, kind: output, shape index: {}]  }
   0x1   :  { %13 = vsyncpa [#allocation5], 0  ;;  %s476_s24 = smov [#allocation2]   ;;  %s477_s26 = smov [#allocation4]  }
   0x2   :  { %s24_s25 = sshll.u32 %s476_s24, 4  ;;  %s38_s27 = sshll.u32 %s477_s26, 4  ;;  %s25_s25 = int_to_ptr.vmem [resolvable:$true] %s24_s25  ;;  %s39_s27 = int_to_ptr.vmem [resolvable:$true] %s38_s27 }
   0x3   :  { %s440_s28 = scalar_lea.vmem %s25_s25, 128  ;;  %p445_p1 = scmp.lt.s32.totalorder %s25_s25, %s25_s25 }
   0x4   :  { %p441_p0 = scmp.ne.s32.totalorder %s25_s25, %s440_s28  ;;  %p446_p2 = scmp.lt.s32.totalorder %s440_s28, %s440_s28 }
   0x6   :  { %p447_p3 = por %p446_p2, %p445_p1 }
   0x8   :  { %p448_p4 = pnand %p447_p3, %p441_p0 }
   0xa   :  { %451 = shalt.err (!%p448_p4)
}
   0xb   :  { %27 = dma.hbm_to_vmem [thread:$0]  %s620_s2, 128, %s25_s25, [#allocation3]  }
   0xc   :  { %s460_s8 = scalar_lea.vmem %s39_s27, 16  ;;  %s464_s9 = scalar_lea.vmem %s39_s27, 32 }
   0xd   :  { %p461_p5 = scmp.ne.s32.totalorder %s39_s27, %s460_s8  ;;  %p465_p6 = scmp.lt.s32.totalorder %s39_s27, %s39_s27 }
   0xe   :  { %p466_p7 = scmp.lt.s32.totalorder %s464_s9, %s460_s8 }
  0x10   :  { %p467_p8 = por %p466_p7, %p465_p6 }
  0x12   :  { %p468_p9 = pnand %p467_p8, %p461_p5 }
  0x14   :  { %471 = shalt.err (!%p468_p9)
}
  0x15   :  { %41 = dma.hbm_to_vmem [thread:$0]  %s623_s5, 16, %s39_s27, [#allocation5]  }
  0x16   :  { %472 = dma.done.wait [#allocation3], 128  }
  0x17   :  { %473 = vsyncadd [#allocation3], 4294967168 }
  0x18   :  { %474 = dma.done.wait [#allocation5], 16  }
  0x19   :  { %475 = vsyncadd [#allocation5], 4294967280  ;;  %v478_v0 = vmov 0.0   ;;  %vm479_vm0 = vmmov 0   ;;  %vm60_vm1 = vcmask 64512   ;;  %v52_v1 = vld [vmem:[#allocation2] sm:$0xff] }
  0x1a   :  { %376 = vmatprep.subr.mxu1 %v478_v0  ;;  %378 = vmatprep.mubr.msk.f32.mxu1 %vm479_vm0, %v478_v0  ;;  %v50_v2 = vld [vmem:[%s618_s0] sm:$0xff]  ;;  %v142_v3 = vld [vmem:[%s622_s4 + $0x38] sm:$0xff]  ;;  %v141_v4 = vld [vmem:[%s622_s4 + $0x30] sm:$0xff]  ;;  %vm255_vm2 = vcmask 1043456   ;;  %s480_s8 = smov 16   ;;  %s481_s11 = smov 48  }
  0x1b   :  { %400 = vmatprep.subr.mxu0 %v478_v0  ;;  %418 = vmatprep.mubr.msk.f32.mxu0 %vm479_vm0, %v478_v0  ;;  %v140_v5 = vld [vmem:[%s622_s4 + $0x28] sm:$0xff]  ;;  %v139_v6 = vld [vmem:[%s622_s4 + $0x20] sm:$0xff]  ;;  %v138_v7 = vld [vmem:[%s622_s4 + $0x18] sm:$0xff]  ;;  %s482_s5 = smov 32   ;;  %vm150_vm3 = vcmask 523264   ;;  %vm234_vm4 = vcmask 130048  }
  0x1c   :  { %377 = vmatpush3.msra.mxu1 %v52_v1  ;;  %v137_v8 = vld [vmem:[%s622_s4 + $0x10] sm:$0xff]  ;;  %v136_v9 = vld [vmem:[%s622_s4 + $0x8] sm:$0xff]  ;;  %v135_v10 = vld [vmem:[%s622_s4] sm:$0xff]  ;;  %vm236_vm5 = vcmask 261120   ;;  %vm238_vm6 = vcmask 392192   ;;  %vm251_vm7 = vcmask 556032  }
  0x1d   :  { %379 = vmatmul.mubr.msk.f32.vlgmr.msra.gmra.mxu1 %vm60_vm1, %v50_v2  ;;  %381 = vmatprep.subr.mxu1 %v478_v0  ;;  %v51_v11 = vld [vmem:[%s619_s1] sm:$0xff]  ;;  %v249_v13 = vld [vmem:[%s624_s6 + $0x38] sm:$0xff]  ;;  %v248_v14 = vld [vmem:[%s624_s6 + $0x30] sm:$0xff]  ;;  %vm329_vm8 = vcmask 31744  }
  0x1e   :  { %382 = vmatpush3.msra.mxu1 %v142_v3  ;;  %397 = vmatprep.mubr.msk.f32.mxu1 %vm479_vm0, %v478_v0  ;;  %v250_v12 = vld [vmem:[%s624_s6 + $0x40] sm:$0xf]  ;;  %v247_v15 = vld [vmem:[%s624_s6 + $0x28] sm:$0xff]  ;;  %v245_v17 = vld [vmem:[%s624_s6 + $0x18] sm:$0xff] }
  0x1f   :  { %383 = vmatprep.subr.mxu1 %v478_v0  ;;  %225 = vrot.lane.b32.xlu0 %v51_v11, %s480_s8  ;;  %v246_v16 = vld [vmem:[%s624_s6 + $0x20] sm:$0xff]  ;;  %v244_v23 = vld [vmem:[%s624_s6 + $0x10] sm:$0xff]  ;;  %v243_v24 = vld [vmem:[%s624_s6 + $0x8] sm:$0xff] }
  0x20   :  { %384 = vmatpush3.msra.mxu1 %v141_v4  ;;  %401 = vmatpush3.msk.msra.mxu0 %vm255_vm2, %v250_v12  ;;  %v349_v18 = vld [vmem:[%s621_s3] ss:$0 sm:$0xff]  ;;  %v351_v31 = vld [vmem:[#allocation4] ss:$0 sm:$0xff] }
  0x21   :  { %385 = vmatprep.subr.mxu1 %v478_v0  ;;  %231 = vrot.lane.b32.xlu1 %v51_v11, %s481_s11  ;;  %v242_v25 = vld [vmem:[%s624_s6] sm:$0xff] }
  0x22   :  { %386 = vmatpush3.msra.mxu1 %v140_v5  ;;  %402 = vmatprep.subr.mxu0 %v478_v0 }
  0x23   :  { %387 = vmatprep.subr.mxu1 %v478_v0  ;;  %403 = vmatpush3.msra.mxu0 %v249_v13 }
  0x24   :  { %388 = vmatpush3.msra.mxu1 %v139_v6  ;;  %404 = vmatprep.subr.mxu0 %v478_v0 }
  0x25   :  { %389 = vmatprep.subr.mxu1 %v478_v0  ;;  %228 = vrot.lane.b32.xlu0 %v51_v11, %s482_s5 }
  0x26   :  { %390 = vmatpush3.msra.mxu1 %v138_v7  ;;  %405 = vmatpush3.msra.mxu0 %v248_v14 }
  0x27   :  { %391 = vmatprep.subr.mxu1 %v478_v0  ;;  %406 = vmatprep.subr.mxu0 %v478_v0 }
  0x28   :  { %392 = vmatpush3.msra.mxu1 %v137_v8  ;;  %407 = vmatpush3.msra.mxu0 %v247_v15 }
  0x29   :  { %393 = vmatprep.subr.mxu1 %v478_v0  ;;  %408 = vmatprep.subr.mxu0 %v478_v0 }
  0x2a   :  { %394 = vmatpush3.msra.mxu1 %v136_v9  ;;  %409 = vmatpush3.msra.mxu0 %v246_v16 }
  0x2b   :  { %395 = vmatprep.subr.mxu1 %v478_v0  ;;  %410 = vmatprep.subr.mxu0 %v478_v0 }
  0x2c   :  { %396 = vmatpush3.msra.mxu1 %v135_v10  ;;  %411 = vmatpush3.msra.mxu0 %v245_v17 }
  0x2d   :  { %412 = vmatprep.subr.mxu0 %v478_v0 }
  0x2e   :  { %413 = vmatpush3.msra.mxu0 %v244_v23 }
  0x2f   :  { %414 = vmatprep.subr.mxu0 %v478_v0 }
  0x30   :  { %415 = vmatpush3.msra.mxu0 %v243_v24 }
  0x31   :  { %416 = vmatprep.subr.mxu0 %v478_v0 }
  0x32   :  { %417 = vmatpush3.msra.mxu0 %v242_v25 }
  0x91   :  { %v226_v26 = vpop.permute.xlu0 %225 }
  0x92   :  { %v235_v27 = vsel %vm234_vm4, %v51_v11, %v226_v26 }
  0x93   :  { %v232_v30 = vpop.permute.xlu1 %231 }
  0x97   :  { %v229_v28 = vpop.permute.xlu0 %228 }
  0x98   :  { %v237_v29 = vsel %vm236_vm5, %v235_v27, %v229_v28 }
  0x99   :  { %v239_v32 = vsel %vm238_vm6, %v237_v29, %v232_v30 }
  0x9a   :  { %v240_v35 = vsel %vm150_vm3, %v239_v32, 1.0 }
  0xdd   :  { %v130_v19 = vpop.f32.mrf.mxu1 }
  0xde   :  { %v131_v20 = vadd.f32 %v349_v18, %v130_v19 }
  0xdf   :  { %v380_v21 = vpop.f32.mrf.mxu1 }
  0xe0   :  { %v134_v22 = vmax.f32 %v131_v20, 0.0 }
  0xe2   :  { %398 = vmatmul.mubr.msk.f32.vlgmr.msra.gmra.mxu1 %vm150_vm3, %v134_v22 }
 0x1a2   :  { %v220_v33 = vpop.f32.mrf.mxu1 }
 0x1a3   :  { %v221_v34 = vadd.f32 %v351_v31, %v220_v33 }
 0x1a4   :  { %v399_v36 = vpop.f32.mrf.mxu1 }
 0x1a5   :  { %v241_v37 = vmul.f32 %v240_v35, %v221_v34 }
 0x1a7   :  { %419 = vmatmul.mubr.msk.f32.vlgmr.msra.gmra.mxu0 %vm251_vm7, %v241_v37 }
 0x267   :  { %v325_v38 = vpop.f32.mrf.mxu0 }
 0x268   :  { %v330_v39 = vsel %vm329_vm8, %v325_v38, -inf }
 0x269   :  { %331 = vmax.xlane.f32.xlu1 %v330_v39  ;;  %v420_v40 = vpop.f32.mrf.mxu0 }
 0x2f2   :  { %v332_v41 = vpop.xlane.xlu1 %331 }
 0x2f3   :  { %v333_v42 = vsub.f32 %v325_v38, %v332_v41 }
 0x2f5   :  { %v334_v43 = vmul.f32 1.442695, %v333_v42 }
 0x2f7   :  { %428 = vpow2.f32 %v334_v43 }
 0x304   :  { %v429_v44 = vpop.eup %428 }
 0x305   :  { %v336_v45 = vsel %vm329_vm8, %v429_v44, 0.0 }
 0x306   :  { %337 = vadd.xlane.f32.xlu0 %v336_v45 }
 0x38f   :  { %v338_v46 = vpop.xlane.xlu0 %337 }
 0x390   :  { %430 = vlog2.f32 %v338_v46 }
 0x39d   :  { %v431_v47 = vpop.eup %430 }
 0x39e   :  { %v340_v48 = vmul.f32 0.6931472, %v431_v47 }
 0x3a0   :  { %v341_v49 = vsub.f32 %v333_v42, %v340_v48 }
 0x3a2   :  { %342 = vst.msk [vmem:[%s625_s7] sm:$0xff] %vm329_vm8, %v341_v49 }
 0x3a3   :  { %347 = vsyncpa [#allocation3], 1 }
 0x3a4   :  { %348 = vsyncpa [#allocation5], 1 }

</bundles_post_ra>
